<compile_context>
chip_gen: v7x
topology: tpu7x:2x2x1
jax: 0.10.0
libtpu: 0.0.40
codegen_flags: <defaults>
</compile_context>

<pallas_src>
import functools
import math

import jax
import jax.numpy as jnp
import numpy as np
from jax.experimental import pallas as pl
from jax.experimental.pallas import tpu as pltpu


# ---------------------------------------------------------------------------
# Small helpers
# ---------------------------------------------------------------------------
def _round_up(x, m):
    return ((x + m - 1) // m) * m


def _choose_time_block(T, max_tc=32):
    """Largest divisor of T that is <= max_tc (grid steps = T // Tc)."""
    for tc in range(min(T, max_tc), 0, -1):
        if T % tc == 0:
            return tc
    return 1


def _vmem_limit(*n_f32_elems):
    """Scoped-VMEM request sized to actual buffer usage (with headroom)."""
    need = 4 * sum(int(n) for n in n_f32_elems)
    return int(min(64 * 2 ** 20, max(16 * 2 ** 20, 2 * need)))


# ---------------------------------------------------------------------------
# Pallas kernels
# ---------------------------------------------------------------------------
def _proj_kernel(x_ref, w_ref, b_ref, out_ref):
    """pre_gates = x @ W_ih_p + b   (one big MXU matmul, outside the recurrence).

    x_ref:   (rows, Din)    rows = Tc * Bp (time-major, batch merged)
    w_ref:   (Din, 4*Hp)
    b_ref:   (1, 4*Hp)      b_ih + b_hh, gate-padded
    out_ref: (rows, 4*Hp)
    """
    out_ref[...] = (
        jnp.dot(x_ref[...], w_ref[...], preferred_element_type=jnp.float32)
        + b_ref[...]
    ).astype(out_ref.dtype)


def _cell_block(pg_ref, w_hh, h0, c0, tc, hp, hseq_ref=None):
    """Run `tc` LSTM cell updates (unrolled).  Gate order i, f, g, o (PyTorch).

    pg_ref: (tc, Bp, 4*Hp) pre-computed x@W_ih + b for this time block.
    w_hh:   (Hp, 4*Hp) value (loaded once per grid block).
    """
    def step(t, carry):
        h, c = carry
        gates = pg_ref[t] + jnp.dot(h, w_hh, preferred_element_type=jnp.float32)
        # Hp is a multiple of 128 -> all four slices are lane-tile aligned.
        i = jax.nn.sigmoid(gates[:, 0 * hp:1 * hp])
        f = jax.nn.sigmoid(gates[:, 1 * hp:2 * hp])
        g = jnp.tanh(gates[:, 2 * hp:3 * hp])
        o = jax.nn.sigmoid(gates[:, 3 * hp:4 * hp])
        c = f * c + i * g
        h = o * jnp.tanh(c)
        if hseq_ref is not None:
            hseq_ref[t] = h.astype(hseq_ref.dtype)
        return h, c

    return jax.lax.fori_loop(0, tc, step, (h0, c0), unroll=True)


def _lstm_seq_kernel(pg_ref, w_hh_ref, hseq_ref, h_scr, c_scr, *, tc, hp):
    """Intermediate LSTM layer: emits the full hidden sequence for the next layer.

    Grid axis 0 = time blocks (sequential / 'arbitrary').
    """
    blk = pl.program_id(0)

    @pl.when(blk == 0)
    def _():
        h_scr[...] = jnp.zeros_like(h_scr)
        c_scr[...] = jnp.zeros_like(c_scr)

    w_hh = w_hh_ref[...]                       # hoisted out of the unrolled loop
    h, c = _cell_block(pg_ref, w_hh, h_scr[...], c_scr[...], tc, hp, hseq_ref)
    h_scr[...] = h
    c_scr[...] = c


def _lstm_last_fc_kernel(pg_ref, w_hh_ref, w_fc_ref, b_fc_ref, out_ref,
                         h_scr, c_scr, *, tc, hp):
    """Last LSTM layer fused with the final Linear on the last timestep.

    Never writes the (T, B, H) hidden sequence to HBM; only a (Bp, Op) block
    is produced at the final grid step.
    """
    blk = pl.program_id(0)

    @pl.when(blk == 0)
    def _():
        h_scr[...] = jnp.zeros_like(h_scr)
        c_scr[...] = jnp.zeros_like(c_scr)

    w_hh = w_hh_ref[...]
    h, c = _cell_block(pg_ref, w_hh, h_scr[...], c_scr[...], tc, hp, None)
    h_scr[...] = h
    c_scr[...] = c

    @pl.when(blk == pl.num_programs(0) - 1)
    def _():
        # dropout before fc is identity in eval mode.
        out_ref[...] = (
            jnp.dot(h, w_fc_ref[...], preferred_element_type=jnp.float32)
            + b_fc_ref[...]
        ).astype(out_ref.dtype)


# ---------------------------------------------------------------------------
# pallas_call wrappers
# ---------------------------------------------------------------------------
def input_projection(x2d, w_ih_p, b_p, rows_per_block):
    """x2d: (T*Bp, Din) -> (T*Bp, 4*Hp) = x @ W_ih_p + b."""
    M, Din = x2d.shape
    G = w_ih_p.shape[1]
    nblk = M // rows_per_block
    return pl.pallas_call(
        _proj_kernel,
        out_shape=jax.ShapeDtypeStruct((M, G), jnp.float32),
        grid_spec=pltpu.PrefetchScalarGridSpec(
            num_scalar_prefetch=0,
            grid=(nblk,),
            in_specs=[
                pl.BlockSpec((rows_per_block, Din), lambda i: (i, 0)),
                pl.BlockSpec((Din, G), lambda i: (0, 0)),
                pl.BlockSpec((1, G), lambda i: (0, 0)),
            ],
            out_specs=pl.BlockSpec((rows_per_block, G), lambda i: (i, 0)),
        ),
        compiler_params=pltpu.CompilerParams(
            dimension_semantics=("parallel",),
            vmem_limit_bytes=_vmem_limit(
                2 * rows_per_block * Din, 2 * Din * G, 2 * G,
                2 * rows_per_block * G),
        ),
        cost_estimate=pl.CostEstimate(
            flops=2 * M * Din * G,
            transcendentals=0,
            bytes_accessed=4 * (M * Din + Din * G + G + M * G)),
    )(x2d, w_ih_p, b_p)


def lstm_recurrence_seq(pre_gates, w_hh_p, tc):
    """pre_gates: (T, Bp, 4*Hp) -> hidden sequence (T, Bp, Hp)."""
    T, Bp, G = pre_gates.shape
    Hp = G // 4
    nblk = T // tc
    kernel = functools.partial(_lstm_seq_kernel, tc=tc, hp=Hp)
    return pl.pallas_call(
        kernel,
        out_shape=jax.ShapeDtypeStruct((T, Bp, Hp), jnp.float32),
        grid_spec=pltpu.PrefetchScalarGridSpec(
            num_scalar_prefetch=0,
            grid=(nblk,),
            in_specs=[
                pl.BlockSpec((tc, Bp, G), lambda b: (b, 0, 0)),
                # Constant index_map: the pipeline fetches W_hh once.
                pl.BlockSpec((Hp, G), lambda b: (0, 0)),
            ],
            out_specs=pl.BlockSpec((tc, Bp, Hp), lambda b: (b, 0, 0)),
            scratch_shapes=[
                pltpu.VMEM((Bp, Hp), jnp.float32),   # h state
                pltpu.VMEM((Bp, Hp), jnp.float32),   # c state
            ],
        ),
        compiler_params=pltpu.CompilerParams(
            dimension_semantics=("arbitrary",),
            vmem_limit_bytes=_vmem_limit(
                2 * tc * Bp * G, 2 * Hp * G, 2 * tc * Bp * Hp, 2 * Bp * Hp),
        ),
        cost_estimate=pl.CostEstimate(
            flops=2 * T * Bp * Hp * G,
            transcendentals=5 * T * Bp * Hp,
            bytes_accessed=4 * (T * Bp * G + Hp * G + T * Bp * Hp)),
    )(pre_gates, w_hh_p)


def lstm_recurrence_last_fc(pre_gates, w_hh_p, w_fc_p, b_fc_p, tc):
    """Last layer: pre_gates (T, Bp, 4*Hp) -> fc(h_T) of shape (Bp, Op)."""
    T, Bp, G = pre_gates.shape
    Hp = G // 4
    Op = w_fc_p.shape[1]
    nblk = T // tc
    kernel = functools.partial(_lstm_last_fc_kernel, tc=tc, hp=Hp)
    return pl.pallas_call(
        kernel,
        out_shape=jax.ShapeDtypeStruct((Bp, Op), jnp.float32),
        grid_spec=pltpu.PrefetchScalarGridSpec(
            num_scalar_prefetch=0,
            grid=(nblk,),
            in_specs=[
                pl.BlockSpec((tc, Bp, G), lambda b: (b, 0, 0)),
                pl.BlockSpec((Hp, G), lambda b: (0, 0)),
                pl.BlockSpec((Hp, Op), lambda b: (0, 0)),
                pl.BlockSpec((1, Op), lambda b: (0, 0)),
            ],
            # Constant output block -> resident across the time grid, written
            # only at the final step (accumulator pattern).
            out_specs=pl.BlockSpec((Bp, Op), lambda b: (0, 0)),
            scratch_shapes=[
                pltpu.VMEM((Bp, Hp), jnp.float32),
                pltpu.VMEM((Bp, Hp), jnp.float32),
            ],
        ),
        compiler_params=pltpu.CompilerParams(
            dimension_semantics=("arbitrary",),
            vmem_limit_bytes=_vmem_limit(
                2 * tc * Bp * G, 2 * Hp * G, 2 * Hp * Op, 2 * Op,
                2 * Bp * Op, 2 * Bp * Hp),
        ),
        cost_estimate=pl.CostEstimate(
            flops=2 * T * Bp * Hp * G + 2 * Bp * Hp * Op,
            transcendentals=5 * T * Bp * Hp,
            bytes_accessed=4 * (T * Bp * G + Hp * G + Hp * Op + Op + Bp * Op)),
    )(pre_gates, w_hh_p, w_fc_p, b_fc_p)


# ---------------------------------------------------------------------------
# Model forward (matches LSTMModel.forward in eval mode)
# ---------------------------------------------------------------------------
def lstm_model_forward(x, pp):
    """x: (B, T, input_size), batch_first, like the PyTorch module."""
    B, T, _ = x.shape
    Hp, O, Op = pp["Hp"], pp["O"], pp["Op"]
    Bp = _round_up(max(B, 8), 8)           # sublane-aligned batch
    Tc = _choose_time_block(T)             # time-block size for the recurrence

    xt = jnp.transpose(x, (1, 0, 2)).astype(jnp.float32)   # (T, B, D) time-major
    seq = jnp.pad(xt, ((0, 0), (0, Bp - B), (0, 0)))        # (T, Bp, D)

    n_layers = len(pp["layers"])
    out_padded = None
    for li, (w_ih_p, w_hh_p, b_p) in enumerate(pp["layers"]):
        d_in = seq.shape[-1]
        # Hoisted input projection for all timesteps (one large matmul).
        pre = input_projection(seq.reshape(T * Bp, d_in), w_ih_p, b_p, Tc * Bp)
        pre = pre.reshape(T, Bp, 4 * Hp)
        if li < n_layers - 1:
            seq = lstm_recurrence_seq(pre, w_hh_p, Tc)       # (T, Bp, Hp)
            # TODO(synk): training-mode inter-layer dropout would be applied here.
        else:
            out_padded = lstm_recurrence_last_fc(
                pre, w_hh_p, pp["fc_w_p"], pp["fc_b_p"], Tc)  # (Bp, Op)
    # final nn.Dropout is identity in eval mode; strip padding.
    return out_padded[:B, :O]


# ---------------------------------------------------------------------------
# Parameters: PyTorch-style init, then pad/transpose once for the kernels
# ---------------------------------------------------------------------------
def init_params(key, input_size, hidden_size, num_layers, output_size):
    """Raw PyTorch-layout params: w_ih (4H, Din), w_hh (4H, H), b_ih, b_hh."""
    bound = 1.0 / math.sqrt(hidden_size)
    params = {"lstm": [], "hidden_size": hidden_size, "output_size": output_size}
    for layer in range(num_layers):
        d_in = input_size if layer == 0 else hidden_size
        key, k1, k2, k3, k4 = jax.random.split(key, 5)
        w_ih = jax.random.uniform(k1, (4 * hidden_size, d_in),
                                  minval=-bound, maxval=bound, dtype=jnp.float32)
        w_hh = jax.random.uniform(k2, (4 * hidden_size, hidden_size),
                                  minval=-bound, maxval=bound, dtype=jnp.float32)
        b_ih = jax.random.uniform(k3, (4 * hidden_size,),
                                  minval=-bound, maxval=bound, dtype=jnp.float32)
        b_hh = jax.random.uniform(k4, (4 * hidden_size,),
                                  minval=-bound, maxval=bound, dtype=jnp.float32)
        params["lstm"].append((w_ih, w_hh, b_ih, b_hh))
    key, k1, k2 = jax.random.split(key, 3)
    params["fc_w"] = jax.random.uniform(k1, (output_size, hidden_size),
                                        minval=-bound, maxval=bound, dtype=jnp.float32)
    params["fc_b"] = jax.random.uniform(k2, (output_size,),
                                        minval=-bound, maxval=bound, dtype=jnp.float32)
    return params


def prepare_pallas_params(raw):
    """Transpose to (in, out) form and zero-pad H -> Hp (mult. of 128), O -> Op.

    Padding preserves the gate blocking [i|f|g|o] and is mathematically exact
    (padded hidden units stay 0 forever).
    """
    H, O = raw["hidden_size"], raw["output_size"]
    Hp = _round_up(H, 128)
    Op = _round_up(O, 128)
    layers = []
    for li, (w_ih, w_hh, b_ih, b_hh) in enumerate(raw["lstm"]):
        d_in = w_ih.shape[1]
        d_in_p = d_in if li == 0 else Hp          # layer>0 consumes padded hidden
        w = w_ih.T.reshape(d_in, 4, H)
        w = jnp.pad(w, ((0, d_in_p - d_in), (0, 0), (0, Hp - H)))
        w_ih_p = w.reshape(d_in_p, 4 * Hp)
        wh = w_hh.T.reshape(H, 4, H)
        wh = jnp.pad(wh, ((0, Hp - H), (0, 0), (0, Hp - H)))
        w_hh_p = wh.reshape(Hp, 4 * Hp)
        b = (b_ih + b_hh).reshape(4, H)
        b_p = jnp.pad(b, ((0, 0), (0, Hp - H))).reshape(1, 4 * Hp)
        layers.append((w_ih_p, w_hh_p, b_p))
    fc_w_p = jnp.pad(raw["fc_w"].T, ((0, Hp - H), (0, Op - O)))
    fc_b_p = jnp.pad(raw["fc_b"], (0, Op - O)).reshape(1, Op)
    return {"layers": layers, "fc_w_p": fc_w_p, "fc_b_p": fc_b_p,
            "Hp": Hp, "O": O, "Op": Op}


# ---------------------------------------------------------------------------
# Pure-JAX reference (PyTorch semantics, eval mode)
# ---------------------------------------------------------------------------
def reference_forward(x, raw):
    h_seq = jnp.transpose(x, (1, 0, 2)).astype(jnp.float32)   # (T, B, D)
    for (w_ih, w_hh, b_ih, b_hh) in raw["lstm"]:
        B = h_seq.shape[1]
        H = w_hh.shape[1]

        def step(carry, x_t, w_ih=w_ih, w_hh=w_hh, b_ih=b_ih, b_hh=b_hh):
            h, c = carry
            gates = x_t @ w_ih.T + h @ w_hh.T + b_ih + b_hh
            i, f, g, o = jnp.split(gates, 4, axis=-1)
            c_new = jax.nn.sigmoid(f) * c + jax.nn.sigmoid(i) * jnp.tanh(g)
            h_new = jax.nn.sigmoid(o) * jnp.tanh(c_new)
            return (h_new, c_new), h_new

        init = (jnp.zeros((B, H), jnp.float32), jnp.zeros((B, H), jnp.float32))
        _, h_seq = jax.lax.scan(step, init, h_seq)
    return h_seq[-1] @ raw["fc_w"].T + raw["fc_b"]


# ---------------------------------------------------------------------------
if __name__ == "__main__":
    B, T = 2, 8
    input_size, hidden_size, num_layers, output_size = 4, 32, 2, 3

    key = jax.random.PRNGKey(0)
    kx, kp = jax.random.split(key)
    x = jax.random.normal(kx, (B, T, input_size), dtype=jnp.float32)

    raw_params = init_params(kp, input_size, hidden_size, num_layers, output_size)
    pallas_params = prepare_pallas_params(raw_params)

    out = lstm_model_forward(x, pallas_params)
    out = jax.block_until_ready(out)

    ref = reference_forward(x, raw_params)
    assert out.shape == (B, output_size), out.shape
    np.testing.assert_allclose(np.asarray(out), np.asarray(ref),
                               rtol=1e-4, atol=1e-4)

    print("KERNEL_OK")
</pallas_src>

<mosaic_0001>
module attributes {stable_mosaic.version = 11 : i64} {
  func.func @_proj_kernel(%arg0: i32, %arg1: memref<64x4xf32, #tpu.memory_space<vmem>>, %arg2: memref<4x512xf32, #tpu.memory_space<vmem>>, %arg3: memref<1x512xf32, #tpu.memory_space<vmem>>, %arg4: memref<64x512xf32, #tpu.memory_space<vmem>>) attributes {dimension_semantics = [#tpu.dimension_semantics<parallel>], iteration_bounds = array<i64: 1>, scalar_prefetch = 0 : i64, scratch_operands = 0 : i64, tpu.core_type = #tpu.core_type<tc>, window_params = [{transform_indices = @transform_0, window_bounds = array<i64: 64, 4>}, {pipeline_mode = #tpu.pipeline_mode<synchronous>, transform_indices = @transform_1, window_bounds = array<i64: 4, 512>}, {pipeline_mode = #tpu.pipeline_mode<synchronous>, transform_indices = @transform_2, window_bounds = array<i64: 1, 512>}, {transform_indices = @transform_3, window_bounds = array<i64: 64, 512>}]} {
    %c0 = arith.constant 0 : index
    %c0_0 = arith.constant 0 : index
    %0 = vector.load %arg1[%c0, %c0_0] : memref<64x4xf32, #tpu.memory_space<vmem>>, vector<64x4xf32>
    %c0_1 = arith.constant 0 : index
    %c0_2 = arith.constant 0 : index
    %1 = vector.load %arg2[%c0_1, %c0_2] : memref<4x512xf32, #tpu.memory_space<vmem>>, vector<4x512xf32>
    %cst = arith.constant dense<0.000000e+00> : vector<64x512xf32>
    %2 = tpu.matmul %0, %1, %cst {dimension_numbers = #tpu.dot_dimension_numbers<[1], [0], [0], [1], [0, 0, 1, 1], [], []>} : vector<64x4xf32>, vector<4x512xf32>, vector<64x512xf32> -> vector<64x512xf32>
    %c0_3 = arith.constant 0 : index
    %c0_4 = arith.constant 0 : index
    %3 = vector.load %arg3[%c0_3, %c0_4] : memref<1x512xf32, #tpu.memory_space<vmem>>, vector<1x512xf32>
    %4 = vector.broadcast %3 : vector<1x512xf32> to vector<64x512xf32>
    %5 = arith.addf %2, %4 : vector<64x512xf32>
    %c0_5 = arith.constant 0 : index
    %c0_6 = arith.constant 0 : index
    %6 = vector.load %arg4[%c0_5, %c0_6] : memref<64x512xf32, #tpu.memory_space<vmem>>, vector<64x512xf32>
    tpu.vector_store %arg4[%c0_5, %c0_6], %5 {strides = array<i32>} : memref<64x512xf32, #tpu.memory_space<vmem>>, vector<64x512xf32>,
    return
  }
  func.func @transform_0(%arg0: i32) -> (i32, i32) {
    %c0_i32 = arith.constant 0 : i32
    %c0_i32_0 = arith.constant 0 : i32
    return %arg0, %c0_i32 : i32, i32
  }
  func.func @transform_1(%arg0: i32) -> (i32, i32) {
    %c0_i32 = arith.constant 0 : i32
    %c0_i32_0 = arith.constant 0 : i32
    %c0_i32_1 = arith.constant 0 : i32
    return %c0_i32, %c0_i32_0 : i32, i32
  }
  func.func @transform_2(%arg0: i32) -> (i32, i32) {
    %c0_i32 = arith.constant 0 : i32
    %c0_i32_0 = arith.constant 0 : i32
    %c0_i32_1 = arith.constant 0 : i32
    return %c0_i32, %c0_i32_0 : i32, i32
  }
  func.func @transform_3(%arg0: i32) -> (i32, i32) {
    %c0_i32 = arith.constant 0 : i32
    %c0_i32_0 = arith.constant 0 : i32
    return %arg0, %c0_i32 : i32, i32
  }
}

</mosaic_0001>

<bundles_post_ra>
// kernel: tpu_custom_call.1
= control target key start
LH: loop header
LB: loop body
LE: loop exit
PB: predicated region body
PF: predicated region fallthrough
CT: control target
= control target key end

     0   :  { %vm76_vm0 = vcmask 1043456   ;;  %v409_v4 = vmov 0.0   ;;  %vm51_vm1 = vcmask 31744   ;;  %s534_s0 = inlined_call_operand.vmem [shape: f32[64,4], index: 0, kind: input, shape index: {}]   ;;  %s535_s1 = inlined_call_operand.vmem [shape: f32[4,512], index: 1, kind: input, shape index: {}]   ;;  %s536_s2 = inlined_call_operand.vmem [shape: f32[1,512], index: 2, kind: input, shape index: {}]   ;;  %s537_s3 = inlined_call_operand.hbm [shape: f32[64,512], index: 3, kind: output, shape index: {}]  }
   0x1   :  { %v23_v0 = vld [vmem:[%s535_s1] sm:$0xff]  ;;  %v24_v1 = vld [vmem:[%s535_s1 + $0x8] sm:$0xff]  ;;  %149 = vmatprep.mubr.f32.mxu0 %v409_v4  ;;  %262 = vmatprep.mubr.f32.mxu1 %v409_v4 }
   0x2   :  { %v49_v2 = vcombine.high %v23_v0, %v23_v0  ;;  %v50_v3 = vcombine.high %v24_v1, %v24_v1  ;;  %v15_v5 = vld [vmem:[%s534_s0] sm:$0xff] }
   0x4   :  { %359 = vmatprep.subr.msk.mxu0 %vm76_vm0, %v49_v2  ;;  %369 = vmatprep.subr.msk.mxu1 %vm76_vm0, %v50_v3 }
   0x5   :  { %8 = vsyncpa [#allocation3], 0  ;;  %360 = vmatpush1.msk.msra.mxu0 %vm76_vm0, %v23_v0  ;;  %370 = vmatpush1.msk.msra.mxu1 %vm76_vm0, %v24_v1  ;;  %v16_v6 = vld [vmem:[%s534_s0 + $0x8] sm:$0xff]  ;;  %v17_v7 = vld [vmem:[%s534_s0 + $0x10] sm:$0xff]  ;;  %v27_v13 = vlaneseq }
   0x6   :  { %361 = vmatmul.mubr.msk.f32.vlgmr.msra.gmra.mrb[0].mxu0 %vm51_vm1, %v15_v5  ;;  %371 = vmatmul.mubr.msk.f32.vlgmr.msra.gmra.mrb[0].mxu1 %vm51_vm1, %v15_v5  ;;  %v18_v8 = vld [vmem:[%s534_s0 + $0x18] sm:$0xff]  ;;  %v19_v9 = vld [vmem:[%s534_s0 + $0x20] sm:$0xff]  ;;  %v20_v10 = vld [vmem:[%s534_s0 + $0x28] sm:$0xff] }
   0x7   :  { %155 = vmatprep.mubr.f32.mxu0 %v409_v4  ;;  %268 = vmatprep.mubr.f32.mxu1 %v409_v4  ;;  %v21_v11 = vld [vmem:[%s534_s0 + $0x30] sm:$0xff]  ;;  %v22_v12 = vld [vmem:[%s534_s0 + $0x38] sm:$0xff]  ;;  %v28_v14 = vshrl.u32 %v27_v13, 7  ;;  %v25_v17 = vld [vmem:[%s536_s2] sm:$0xf]  ;;  %s410_s0 = smov [#allocation2]  }
   0x8   :  { %s348_s2 = sshll.u32 %s410_s0, 4  ;;  %s349_s2 = int_to_ptr.vmem [resolvable:$true] %s348_s2 }
   0x9   :  { %v29_v15 = vsub.s32 0, %v28_v14  ;;  %v37_v16 = vsub.s32 2, %v28_v14  ;;  %v33_v18 = vsub.s32 1, %v28_v14  ;;  %v41_v19 = vsub.s32 3, %v28_v14  ;;  %s385_s6 = scalar_lea.vmem %s349_s2, 4096  ;;  %p390_p1 = scmp.lt.s32.totalorder %s349_s2, %s349_s2 }
   0xa   :  { %362 = vmatmul.mubr.msk.f32.gmra.mrb[2].mxu0 %vm51_vm1, %v16_v6  ;;  %372 = vmatmul.mubr.msk.f32.gmra.mrb[2].mxu1 %vm51_vm1, %v16_v6  ;;  %p386_p0 = scmp.ne.s32.totalorder %s349_s2, %s385_s6  ;;  %p391_p2 = scmp.lt.s32.totalorder %s385_s6, %s385_s6 }
   0xb   :  { %161 = vmatprep.mubr.f32.mxu0 %v409_v4  ;;  %274 = vmatprep.mubr.f32.mxu1 %v409_v4  ;;  %v482_v20 = vrot.slane %v25_v17, %v29_v15  ;;  %v484_v21 = vrot.slane %v25_v17, %v37_v16  ;;  %v486_v22 = vrot.slane %v25_v17, %v33_v18 }
   0xc   :  { %v488_v23 = vrot.slane %v25_v17, %v41_v19  ;;  %p392_p3 = por %p391_p2, %p390_p1 }
   0xe   :  { %363 = vmatmul.mubr.msk.f32.gmra.mrb[4].mxu0 %vm51_vm1, %v17_v7  ;;  %373 = vmatmul.mubr.msk.f32.gmra.mrb[4].mxu1 %vm51_vm1, %v17_v7  ;;  %p393_p4 = pnand %p392_p3, %p386_p0 }
   0xf   :  { %167 = vmatprep.mubr.f32.mxu0 %v409_v4  ;;  %280 = vmatprep.mubr.f32.mxu1 %v409_v4 }
  0x12   :  { %364 = vmatmul.mubr.msk.f32.gmra.mrb[6].mxu0 %vm51_vm1, %v18_v8  ;;  %374 = vmatmul.mubr.msk.f32.gmra.mrb[6].mxu1 %vm51_vm1, %v18_v8 }
  0x13   :  { %173 = vmatprep.mubr.f32.mxu0 %v409_v4  ;;  %286 = vmatprep.mubr.f32.mxu1 %v409_v4 }
  0x16   :  { %365 = vmatmul.mubr.msk.f32.gmra.mrb[8].mxu0 %vm51_vm1, %v19_v9  ;;  %375 = vmatmul.mubr.msk.f32.gmra.mrb[8].mxu1 %vm51_vm1, %v19_v9 }
  0x17   :  { %179 = vmatprep.mubr.f32.mxu0 %v409_v4  ;;  %292 = vmatprep.mubr.f32.mxu1 %v409_v4 }
  0x1a   :  { %366 = vmatmul.mubr.msk.f32.gmra.mrb[10].mxu0 %vm51_vm1, %v20_v10  ;;  %376 = vmatmul.mubr.msk.f32.gmra.mrb[10].mxu1 %vm51_vm1, %v20_v10 }
  0x1b   :  { %185 = vmatprep.mubr.f32.mxu0 %v409_v4  ;;  %298 = vmatprep.mubr.f32.mxu1 %v409_v4 }
  0x1e   :  { %367 = vmatmul.mubr.msk.f32.gmra.mrb[12].mxu0 %vm51_vm1, %v21_v11  ;;  %377 = vmatmul.mubr.msk.f32.gmra.mrb[12].mxu1 %vm51_vm1, %v21_v11 }
  0x1f   :  { %191 = vmatprep.mubr.f32.mxu0 %v409_v4  ;;  %304 = vmatprep.mubr.f32.mxu1 %v409_v4 }
  0x22   :  { %368 = vmatmul.mubr.msk.f32.gmra.mrb[14].mxu0 %vm51_vm1, %v22_v12  ;;  %378 = vmatmul.mubr.msk.f32.gmra.mrb[14].mxu1 %vm51_vm1, %v22_v12 }
  0xd9   :  { %v151_v24 = vpop.f32.mrb[0].mxu0  ;;  %v264_v25 = vpop.f32.mrb[0].mxu1 }
  0xda   :  { %v152_v26 = vadd.f32 %v151_v24, %v482_v20  ;;  %v265_v27 = vadd.f32 %v264_v25, %v484_v21  ;;  %v153_v28 = vpop.f32.mrb[1].mxu0  ;;  %v266_v29 = vpop.f32.mrb[1].mxu1 }
  0xdb   :  { %v154_v30 = vadd.f32 %v153_v28, %v486_v22  ;;  %v267_v31 = vadd.f32 %v266_v29, %v488_v23 }
  0xdc   :  { %311 = vst [vmem:[#allocation2] sm:$0xff] %v152_v26  ;;  %313 = vst [vmem:[#allocation2 + $0x10] sm:$0xff] %v265_v27 }
  0xdd   :  { %312 = vst [vmem:[#allocation2 + $0x8] sm:$0xff] %v154_v30  ;;  %314 = vst [vmem:[#allocation2 + $0x18] sm:$0xff] %v267_v31  ;;  %v157_v32 = vpop.f32.mrb[2].mxu0  ;;  %v270_v33 = vpop.f32.mrb[2].mxu1 }
  0xde   :  { %v158_v34 = vadd.f32 %v157_v32, %v482_v20  ;;  %v271_v35 = vadd.f32 %v270_v33, %v484_v21  ;;  %v159_v36 = vpop.f32.mrb[3].mxu0  ;;  %v272_v37 = vpop.f32.mrb[3].mxu1 }
  0xdf   :  { %v160_v38 = vadd.f32 %v159_v36, %v486_v22  ;;  %v273_v39 = vadd.f32 %v272_v37, %v488_v23 }
  0xe0   :  { %315 = vst [vmem:[#allocation2 + $0x20] sm:$0xff] %v158_v34  ;;  %317 = vst [vmem:[#allocation2 + $0x30] sm:$0xff] %v271_v35 }
  0xe1   :  { %316 = vst [vmem:[#allocation2 + $0x28] sm:$0xff] %v160_v38  ;;  %318 = vst [vmem:[#allocation2 + $0x38] sm:$0xff] %v273_v39  ;;  %v163_v40 = vpop.f32.mrb[4].mxu0  ;;  %v276_v41 = vpop.f32.mrb[4].mxu1 }
  0xe2   :  { %v164_v42 = vadd.f32 %v163_v40, %v482_v20  ;;  %v277_v43 = vadd.f32 %v276_v41, %v484_v21  ;;  %v165_v44 = vpop.f32.mrb[5].mxu0  ;;  %v278_v45 = vpop.f32.mrb[5].mxu1 }
  0xe3   :  { %v166_v46 = vadd.f32 %v165_v44, %v486_v22  ;;  %v279_v47 = vadd.f32 %v278_v45, %v488_v23 }
  0xe4   :  { %319 = vst [vmem:[#allocation2 + $0x40] sm:$0xff] %v164_v42  ;;  %321 = vst [vmem:[#allocation2 + $0x50] sm:$0xff] %v277_v43 }
  0xe5   :  { %320 = vst [vmem:[#allocation2 + $0x48] sm:$0xff] %v166_v46  ;;  %322 = vst [vmem:[#allocation2 + $0x58] sm:$0xff] %v279_v47  ;;  %v169_v48 = vpop.f32.mrb[6].mxu0  ;;  %v282_v49 = vpop.f32.mrb[6].mxu1 }
  0xe6   :  { %v170_v50 = vadd.f32 %v169_v48, %v482_v20  ;;  %v283_v51 = vadd.f32 %v282_v49, %v484_v21  ;;  %v171_v52 = vpop.f32.mrb[7].mxu0  ;;  %v284_v53 = vpop.f32.mrb[7].mxu1 }
  0xe7   :  { %v172_v54 = vadd.f32 %v171_v52, %v486_v22  ;;  %v285_v55 = vadd.f32 %v284_v53, %v488_v23 }
  0xe8   :  { %323 = vst [vmem:[#allocation2 + $0x60] sm:$0xff] %v170_v50  ;;  %325 = vst [vmem:[#allocation2 + $0x70] sm:$0xff] %v283_v51 }
  0xe9   :  { %324 = vst [vmem:[#allocation2 + $0x68] sm:$0xff] %v172_v54  ;;  %326 = vst [vmem:[#allocation2 + $0x78] sm:$0xff] %v285_v55  ;;  %v175_v56 = vpop.f32.mrb[8].mxu0  ;;  %v288_v57 = vpop.f32.mrb[8].mxu1 }
  0xea   :  { %v176_v58 = vadd.f32 %v175_v56, %v482_v20  ;;  %v289_v59 = vadd.f32 %v288_v57, %v484_v21  ;;  %v177_v60 = vpop.f32.mrb[9].mxu0  ;;  %v290_v61 = vpop.f32.mrb[9].mxu1 }
  0xeb   :  { %v178_v62 = vadd.f32 %v177_v60, %v486_v22  ;;  %v291_v63 = vadd.f32 %v290_v61, %v488_v23 }
  0xec   :  { %327 = vst [vmem:[#allocation2 + $0x80] sm:$0xff] %v176_v58  ;;  %329 = vst [vmem:[#allocation2 + $0x90] sm:$0xff] %v289_v59 }
  0xed   :  { %328 = vst [vmem:[#allocation2 + $0x88] sm:$0xff] %v178_v62  ;;  %330 = vst [vmem:[#allocation2 + $0x98] sm:$0xff] %v291_v63  ;;  %v181_v0 = vpop.f32.mrb[10].mxu0  ;;  %v294_v1 = vpop.f32.mrb[10].mxu1 }
  0xee   :  { %v182_v2 = vadd.f32 %v181_v0, %v482_v20  ;;  %v295_v3 = vadd.f32 %v294_v1, %v484_v21  ;;  %v183_v4 = vpop.f32.mrb[11].mxu0  ;;  %v296_v5 = vpop.f32.mrb[11].mxu1 }
  0xef   :  { %v184_v6 = vadd.f32 %v183_v4, %v486_v22  ;;  %v297_v7 = vadd.f32 %v296_v5, %v488_v23 }
  0xf0   :  { %331 = vst [vmem:[#allocation2 + $0xa0] sm:$0xff] %v182_v2  ;;  %333 = vst [vmem:[#allocation2 + $0xb0] sm:$0xff] %v295_v3 }
  0xf1   :  { %332 = vst [vmem:[#allocation2 + $0xa8] sm:$0xff] %v184_v6  ;;  %334 = vst [vmem:[#allocation2 + $0xb8] sm:$0xff] %v297_v7  ;;  %v187_v8 = vpop.f32.mrb[12].mxu0  ;;  %v300_v9 = vpop.f32.mrb[12].mxu1 }
  0xf2   :  { %v188_v10 = vadd.f32 %v187_v8, %v482_v20  ;;  %v301_v11 = vadd.f32 %v300_v9, %v484_v21  ;;  %v189_v12 = vpop.f32.mrb[13].mxu0  ;;  %v302_v13 = vpop.f32.mrb[13].mxu1 }
  0xf3   :  { %v190_v14 = vadd.f32 %v189_v12, %v486_v22  ;;  %v303_v15 = vadd.f32 %v302_v13, %v488_v23 }
  0xf4   :  { %335 = vst [vmem:[#allocation2 + $0xc0] sm:$0xff] %v188_v10  ;;  %337 = vst [vmem:[#allocation2 + $0xd0] sm:$0xff] %v301_v11 }
  0xf5   :  { %336 = vst [vmem:[#allocation2 + $0xc8] sm:$0xff] %v190_v14  ;;  %338 = vst [vmem:[#allocation2 + $0xd8] sm:$0xff] %v303_v15  ;;  %v193_v16 = vpop.f32.mrb[14].mxu0  ;;  %v306_v17 = vpop.f32.mrb[14].mxu1 }
  0xf6   :  { %v194_v18 = vadd.f32 %v193_v16, %v482_v20  ;;  %v307_v19 = vadd.f32 %v306_v17, %v484_v21  ;;  %v195_v24 = vpop.f32.mrb[15].mxu0  ;;  %v308_v25 = vpop.f32.mrb[15].mxu1 }
  0xf7   :  { %v196_v26 = vadd.f32 %v195_v24, %v486_v22  ;;  %v309_v27 = vadd.f32 %v308_v25, %v488_v23 }
  0xf8   :  { %339 = vst [vmem:[#allocation2 + $0xe0] sm:$0xff] %v194_v18  ;;  %341 = vst [vmem:[#allocation2 + $0xf0] sm:$0xff] %v307_v19 }
  0xf9   :  { %340 = vst [vmem:[#allocation2 + $0xe8] sm:$0xff] %v196_v26  ;;  %342 = vst [vmem:[#allocation2 + $0xf8] sm:$0xff] %v309_v27 }
  0xfa   :  { %396 = shalt.err (!%p393_p4)
}
  0xfb   :  { %s397_s9 = scalar_lea.hbm %s537_s3, 4096 }
  0xfc   :  { %p398_p5 = scmp.ne.s32.totalorder %s537_s3, %s397_s9  ;;  %p401_p6 = scmp.lt.u32.totalorder %s397_s9, %s537_s3 }
  0xfe   :  { %p403_p7 = pnand %p401_p6, %p398_p5 }
 0x100   :  { %406 = shalt.err (!%p403_p7)
}
 0x101   :  { %s411_s14 = smov 512   ;;  %s412_s15 = smov 32  }
 0x102   :  { %354 = dma.vmem_to_hbm [thread:$0]  %s349_s2, 4096, %s537_s3, [#allocation3], %s411_s14, %s411_s14, %s412_s15  }
 0x103   :  { %407 = dma.done.wait [#allocation3], 4096  }
 0x104   :  { %408 = vsyncadd [#allocation3], 4294963200 }
 0x105   :  { %358 = vsyncpa [#allocation3], 1 }

</bundles_post_ra>
